<compile_context>
chip_gen: v6e
topology: v6e:2x2x1
jax: 0.10.0
libtpu: 0.0.40
codegen_flags: <defaults>
</compile_context>

<pallas_src>
import functools

import jax
import jax.numpy as jnp
from jax import lax
from jax.experimental import pallas as pl
from jax.experimental.pallas import tpu as pltpu


NEG_INF = -1e30
LANES = 128                       # vreg lane width; KV tile width & m/l scratch width
VMEM_LIMIT = 32 * 1024 * 1024     # raise v5e's 16 MiB scoped default; default elsewhere


def _round_up(n, m):
    return ((n + m - 1) // m) * m


def _pick_div(total, candidates):
    for c in candidates:
        if total % c == 0:
            return c
    return total


def _pick_row_tile(rows):
    # Largest bf16-friendly tile that divides `rows` and leaves >=2 pipeline steps.
    for c in (512, 256, 128, 64, 32, 16):
        if rows % c == 0 and rows // c >= 2:
            return c
    return rows


# ---------------------------------------------------------------------------
# Kernel 1: fused Q/K/V projection, tiled over rows / N / K (P1 + P3 matmul).
# ---------------------------------------------------------------------------
def _qkv_proj_kernel(x_ref, w_ref, b_ref, o_ref, acc_ref):
    kk = pl.program_id(2)

    @pl.when(kk == 0)
    def _init():
        acc_ref[...] = jnp.zeros_like(acc_ref)

    acc_ref[...] += jnp.dot(x_ref[...], w_ref[...],
                            preferred_element_type=jnp.float32)

    @pl.when(kk == pl.num_programs(2) - 1)
    def _finalize():
        o_ref[...] = (acc_ref[...] + b_ref[...]).astype(o_ref.dtype)


# ---------------------------------------------------------------------------
# Kernel 2: flash attention with online softmax.  grid = (B*n_q, n_kv)
# ---------------------------------------------------------------------------
def _flash_attn_kernel(q_ref, k_ref, v_ref, o_ref, m_sc, l_sc, acc_sc,
                       *, block_kv, seq_len, needs_mask, de_rep):
    ki = pl.program_id(1)

    @pl.when(ki == 0)
    def _init():
        m_sc[...] = jnp.full_like(m_sc, NEG_INF)
        l_sc[...] = jnp.zeros_like(l_sc)
        acc_sc[...] = jnp.zeros_like(acc_sc)

    q = q_ref[0]          # (tq, De_p) bf16, already scaled by 1/sqrt(dim_in)
    k = k_ref[0]          # (tkv, De_p) bf16
    v = v_ref[0]          # (tkv, De_p) bf16

    # Contract last dims directly -> no materialized k.T transpose.
    s = lax.dot_general(q, k, dimension_numbers=(((1,), (1,)), ((), ())),
                        preferred_element_type=jnp.float32)       # (tq, tkv) f32

    if needs_mask:
        # Padded keys only exist past `seq_len`; tiles before the boundary pass
        # everything through (valid >= block_kv).  One vcmp + one vsel per step.
        valid = seq_len - ki * block_kv
        key_in_tile = lax.broadcasted_iota(jnp.int32, s.shape, 1)
        s = jnp.where(key_in_tile < valid, s, NEG_INF)

    # Lane-replicated running stats: m/l scratch is (tq, 128) so no cross-lane
    # broadcast is needed against the (tq, 128)-wide score tile.
    m_prev = m_sc[...]
    l_prev = l_sc[...]
    m_curr = jnp.max(s, axis=-1, keepdims=True)       # (tq, 1)
    m_next = jnp.maximum(m_prev, m_curr)              # (tq, 128) replicated
    p = jnp.exp(s - m_next)                           # f32 softmax numerator
    alpha = jnp.exp(m_prev - m_next)                  # (tq, 128) replicated
    l_sc[...] = alpha * l_prev + jnp.sum(p, axis=-1, keepdims=True)
    m_sc[...] = m_next

    pv = jnp.dot(p.astype(v.dtype), v, preferred_element_type=jnp.float32)
    alpha_de = alpha if de_rep == 1 else jnp.tile(alpha, (1, de_rep))
    acc_sc[...] = acc_sc[...] * alpha_de + pv

    @pl.when(ki == pl.num_programs(1) - 1)
    def _finalize():
        inv_l = pl.reciprocal(l_sc[...], approx=True)   # EUP slot (free-ish)
        inv_de = inv_l if de_rep == 1 else jnp.tile(inv_l, (1, de_rep))
        o_ref[0] = (acc_sc[...] * inv_de).astype(o_ref.dtype)


def self_attention(x, wq, bq, wk, bk, wv, bv, *, block_q_max=256):
    """x: (B, S, Din); wq/wk/wv: (Din, De); bq/bk/bv: (De,) or (1, De).
    Returns (B, S, De), matching PyTorch SelfAttention.forward."""
    B, S, Din = x.shape
    De = wq.shape[1]
    out_dtype = x.dtype
    # PyTorch quirk: __init__ sets self.dim_emb = dim_in, so scale = 1/sqrt(dim_in).
    scale = 1.0 / (Din ** 0.5)

    # ---- lane-dense padding: feature dims -> multiples of 128 ----
    Din_p = _round_up(Din, 128)
    De_p = _round_up(De, 128)

    block_kv = LANES                                   # 128-wide key tiles
    block_q = min(block_q_max, _round_up(S, block_kv)) # multiple of block_kv
    S_p = _round_up(S, block_q)                        # divisible by both tiles

    x_p = jnp.pad(x, ((0, 0), (0, S_p - S), (0, Din_p - Din)))

    def _pad_w(w):
        return jnp.pad(w, ((0, Din_p - Din), (0, De_p - De)))

    def _pad_b(b):
        return jnp.pad(jnp.reshape(b, (1, -1)), ((0, 0), (0, De_p - De)))

    # Fold the score scale into the Q projection; fuse Q/K/V weights.
    wqkv = jnp.concatenate([_pad_w(wq * scale), _pad_w(wk), _pad_w(wv)], axis=1)
    bqkv = jnp.concatenate([_pad_b(bq * scale), _pad_b(bk), _pad_b(bv)], axis=1)

    # bf16 MXU operands, f32 accumulation inside the kernels.
    x2d = x_p.reshape(B * S_p, Din_p).astype(jnp.bfloat16)
    wqkv_bf = wqkv.astype(jnp.bfloat16)
    bqkv_f32 = bqkv.astype(jnp.float32)

    rows = B * S_p
    N3 = 3 * De_p
    tr = _pick_row_tile(rows)
    tn = _pick_div(N3, (512, 384, 256, 128))
    tk = _pick_div(Din_p, (512, 256, 128))

    qkv2d = pl.pallas_call(
        _qkv_proj_kernel,
        out_shape=jax.ShapeDtypeStruct((rows, N3), jnp.bfloat16),
        grid_spec=pltpu.PrefetchScalarGridSpec(
            num_scalar_prefetch=0,
            grid=(rows // tr, N3 // tn, Din_p // tk),
            in_specs=[
                pl.BlockSpec((tr, tk), lambda r, n, k: (r, k)),
                pl.BlockSpec((tk, tn), lambda r, n, k: (k, n)),
                pl.BlockSpec((1, tn), lambda r, n, k: (0, n)),
            ],
            out_specs=pl.BlockSpec((tr, tn), lambda r, n, k: (r, n)),
            scratch_shapes=[pltpu.VMEM((tr, tn), jnp.float32)],
        ),
        compiler_params=pltpu.CompilerParams(
            dimension_semantics=("parallel", "parallel", "arbitrary"),
            vmem_limit_bytes=VMEM_LIMIT),
    )(x2d, wqkv_bf, bqkv_f32)

    qkv = qkv2d.reshape(B, S_p, N3)

    n_q = S_p // block_q
    n_kv = S_p // block_kv
    de_rep = De_p // LANES

    kernel = functools.partial(
        _flash_attn_kernel, block_kv=block_kv, seq_len=S,
        needs_mask=(S_p != S), de_rep=de_rep)

    # Fold (batch, q-tile) into one parallel axis for megacore granularity.
    out_p = pl.pallas_call(
        kernel,
        out_shape=jax.ShapeDtypeStruct((B, S_p, De_p), out_dtype),
        grid_spec=pltpu.PrefetchScalarGridSpec(
            num_scalar_prefetch=0,
            grid=(B * n_q, n_kv),
            in_specs=[
                # Q / K / V are De_p-wide slices (block index 0/1/2) of the
                # fused qkv tensor along its last dim.
                pl.BlockSpec((1, block_q, De_p),
                             lambda r, ki: (r // n_q, r % n_q, 0)),
                pl.BlockSpec((1, block_kv, De_p),
                             lambda r, ki: (r // n_q, ki, 1)),
                pl.BlockSpec((1, block_kv, De_p),
                             lambda r, ki: (r // n_q, ki, 2)),
            ],
            out_specs=pl.BlockSpec((1, block_q, De_p),
                                   lambda r, ki: (r // n_q, r % n_q, 0)),
            scratch_shapes=[
                pltpu.VMEM((block_q, LANES), jnp.float32),   # running max m (lane-replicated)
                pltpu.VMEM((block_q, LANES), jnp.float32),   # running sum l (lane-replicated)
                pltpu.VMEM((block_q, De_p), jnp.float32),    # output accumulator
            ],
        ),
        compiler_params=pltpu.CompilerParams(
            dimension_semantics=("parallel", "arbitrary"),
            vmem_limit_bytes=VMEM_LIMIT),
    )(qkv, qkv, qkv)

    if S_p == S and De_p == De:
        return out_p
    return out_p[:, :S, :De]


def _reference(x, wq, bq, wk, bk, wv, bv):
    Din = x.shape[-1]
    q = x @ wq + jnp.reshape(bq, (1, -1))
    k = x @ wk + jnp.reshape(bk, (1, -1))
    v = x @ wv + jnp.reshape(bv, (1, -1))
    scores = jnp.einsum("bqd,bkd->bqk", q, k) / (Din ** 0.5)
    attn = jax.nn.softmax(scores, axis=-1)
    return jnp.einsum("bqk,bkd->bqd", attn, v)


if __name__ == "__main__":
    # S=200 exercises multiple KV tiles, online-softmax accumulation AND the
    # padded-key mask (S_p=256); De!=Din exercises feature-dim padding + slice.
    B, S, dim_in, dim_emb = 2, 200, 32, 48

    key = jax.random.PRNGKey(0)
    kx, kwq, kbq, kwk, kbk, kwv, kbv = jax.random.split(key, 7)

    bound = 1.0 / (dim_in ** 0.5)
    init = lambda k, shape: jax.random.uniform(k, shape, jnp.float32, -bound, bound)

    x = jax.random.normal(kx, (B, S, dim_in), jnp.float32)
    wq = init(kwq, (dim_in, dim_emb)); bq = init(kbq, (1, dim_emb))
    wk = init(kwk, (dim_in, dim_emb)); bk = init(kbk, (1, dim_emb))
    wv = init(kwv, (dim_in, dim_emb)); bv = init(kbv, (1, dim_emb))

    out = self_attention(x, wq, bq, wk, bk, wv, bv)
    out = jax.block_until_ready(out)

    ref = _reference(x, wq, bq, wk, bk, wv, bv)
    assert out.shape == (B, S, dim_emb)
    # Loose tolerance: MXU operands are bf16 and the softmax denominator uses the
    # approximate EUP reciprocal (documented trade-off; full-f32 would hit ~1e-5).
    assert jnp.allclose(out, ref, atol=3e-2, rtol=3e-2), (
        "mismatch vs reference, max abs err = "
        f"{float(jnp.max(jnp.abs(out - ref)))}")

    print("KERNEL_OK")
</pallas_src>

<mosaic_0001>
module attributes {stable_mosaic.version = 11 : i64} {
  func.func @_qkv_proj_kernel(%arg0: i32, %arg1: i32, %arg2: i32, %arg3: memref<256x128xbf16, #tpu.memory_space<vmem>>, %arg4: memref<128x384xbf16, #tpu.memory_space<vmem>>, %arg5: memref<1x384xf32, #tpu.memory_space<vmem>>, %arg6: memref<256x384xbf16, #tpu.memory_space<vmem>>, %arg7: memref<256x384xf32, #tpu.memory_space<vmem>>) attributes {dimension_semantics = [#tpu.dimension_semantics<parallel>, #tpu.dimension_semantics<parallel>, #tpu.dimension_semantics<arbitrary>], iteration_bounds = array<i64: 2, 1, 1>, scalar_prefetch = 0 : i64, scratch_operands = 1 : i64, tpu.core_type = #tpu.core_type<tc>, window_params = [{transform_indices = @transform_0, window_bounds = array<i64: 256, 128>}, {transform_indices = @transform_1, window_bounds = array<i64: 128, 384>}, {transform_indices = @transform_2, window_bounds = array<i64: 1, 384>}, {transform_indices = @transform_3, window_bounds = array<i64: 256, 384>}]} {
    %c0_i32 = arith.constant 0 : i32
    %0 = arith.cmpi eq, %arg2, %c0_i32 : i32
    %1 = arith.extui %0 : i1 to i32
    %c0_i32_0 = arith.constant 0 : i32
    %2 = arith.cmpi ne, %1, %c0_i32_0 : i32
    scf.if %2 {
      %cst_10 = arith.constant 0.000000e+00 : f32
      %12 = vector.broadcast %cst_10 : f32 to vector<256x384xf32>
      %c0_11 = arith.constant 0 : index
      %c0_12 = arith.constant 0 : index
      %13 = vector.load %arg7[%c0_11, %c0_12] : memref<256x384xf32, #tpu.memory_space<vmem>>, vector<256x384xf32>
      tpu.vector_store %arg7[%c0_11, %c0_12], %12 {strides = array<i32>} : memref<256x384xf32, #tpu.memory_space<vmem>>, vector<256x384xf32>,
    } else {
    }
    %c0 = arith.constant 0 : index
    %c0_1 = arith.constant 0 : index
    %3 = vector.load %arg7[%c0, %c0_1] : memref<256x384xf32, #tpu.memory_space<vmem>>, vector<256x384xf32>
    %c0_2 = arith.constant 0 : index
    %c0_3 = arith.constant 0 : index
    %4 = vector.load %arg3[%c0_2, %c0_3] : memref<256x128xbf16, #tpu.memory_space<vmem>>, vector<256x128xbf16>
    %c0_4 = arith.constant 0 : index
    %c0_5 = arith.constant 0 : index
    %5 = vector.load %arg4[%c0_4, %c0_5] : memref<128x384xbf16, #tpu.memory_space<vmem>>, vector<128x384xbf16>
    %cst = arith.constant dense<0.000000e+00> : vector<256x384xf32>
    %6 = tpu.matmul %4, %5, %cst {dimension_numbers = #tpu.dot_dimension_numbers<[1], [0], [0], [1], [0, 0, 1, 1], [], []>} : vector<256x128xbf16>, vector<128x384xbf16>, vector<256x384xf32> -> vector<256x384xf32>
    %7 = arith.addf %3, %6 : vector<256x384xf32>
    %c0_6 = arith.constant 0 : index
    %c0_7 = arith.constant 0 : index
    %8 = vector.load %arg7[%c0_6, %c0_7] : memref<256x384xf32, #tpu.memory_space<vmem>>, vector<256x384xf32>
    tpu.vector_store %arg7[%c0_6, %c0_7], %7 {strides = array<i32>} : memref<256x384xf32, #tpu.memory_space<vmem>>, vector<256x384xf32>,
    %c0_i32_8 = arith.constant 0 : i32
    %9 = arith.cmpi eq, %arg2, %c0_i32_8 : i32
    %10 = arith.extui %9 : i1 to i32
    %c0_i32_9 = arith.constant 0 : i32
    %11 = arith.cmpi ne, %10, %c0_i32_9 : i32
    scf.if %11 {
      %c0_10 = arith.constant 0 : index
      %c0_11 = arith.constant 0 : index
      %12 = vector.load %arg7[%c0_10, %c0_11] : memref<256x384xf32, #tpu.memory_space<vmem>>, vector<256x384xf32>
      %c0_12 = arith.constant 0 : index
      %c0_13 = arith.constant 0 : index
      %13 = vector.load %arg5[%c0_12, %c0_13] : memref<1x384xf32, #tpu.memory_space<vmem>>, vector<1x384xf32>
      %14 = vector.broadcast %13 : vector<1x384xf32> to vector<256x384xf32>
      %15 = arith.addf %12, %14 : vector<256x384xf32>
      %16 = arith.truncf %15 : vector<256x384xf32> to vector<256x384xbf16>
      %c0_14 = arith.constant 0 : index
      %c0_15 = arith.constant 0 : index
      %17 = vector.load %arg6[%c0_14, %c0_15] : memref<256x384xbf16, #tpu.memory_space<vmem>>, vector<256x384xbf16>
      tpu.vector_store %arg6[%c0_14, %c0_15], %16 {strides = array<i32>} : memref<256x384xbf16, #tpu.memory_space<vmem>>, vector<256x384xbf16>,
    } else {
    }
    return
  }
  func.func @transform_0(%arg0: i32, %arg1: i32, %arg2: i32) -> (i32, i32) {
    %c0_i32 = arith.constant 0 : i32
    return %arg0, %arg2 : i32, i32
  }
  func.func @transform_1(%arg0: i32, %arg1: i32, %arg2: i32) -> (i32, i32) {
    %c0_i32 = arith.constant 0 : i32
    return %arg2, %arg1 : i32, i32
  }
  func.func @transform_2(%arg0: i32, %arg1: i32, %arg2: i32) -> (i32, i32) {
    %c0_i32 = arith.constant 0 : i32
    %c0_i32_0 = arith.constant 0 : i32
    return %c0_i32, %arg1 : i32, i32
  }
  func.func @transform_3(%arg0: i32, %arg1: i32, %arg2: i32) -> (i32, i32) {
    %c0_i32 = arith.constant 0 : i32
    return %arg0, %arg1 : i32, i32
  }
}

</mosaic_0001>

<bundles_post_ra>
// kernel: tpu_custom_call.1
= control target key start
LH: loop header
LB: loop body
LE: loop exit
PB: predicated region body
PF: predicated region fallthrough
CT: control target
= control target key end

     0   :  { %8 = vsyncpa [#allocation4], 0  ;;  %s3005_s0 = inlined_call_operand.hbm [shape: bf16[512,128], index: 0, kind: input, shape index: {}]   ;;  %s3006_s1 = inlined_call_operand.hbm [shape: bf16[128,384], index: 1, kind: input, shape index: {}]   ;;  %s3007_s2 = inlined_call_operand.vmem [shape: f32[1,384], index: 2, kind: input, shape index: {}]   ;;  %s3008_s3 = inlined_call_operand.hbm [shape: bf16[512,384], index: 3, kind: output, shape index: {}]  }
   0x1   :  { %10 = vsyncpa [#allocation4 + $0x1], 0 }
   0x2   :  { %11 = vsyncpa [#allocation7], 0 }
   0x3   :  { %12 = vsyncpa [#allocation5], 0 }
   0x4   :  { %14 = vsyncpa [#allocation5 + $0x1], 0  ;;  %s2599_s12 = smov 0   ;;  %s2601_s13 = smov 0  }
   0x5   :  { %s2603_s14 = smov 0   ;;  %s2605_s15 = smov 0  }
   0x6   :  { %s2607_s16 = smov 0   ;;  %s2609_s17 = smov 0  }
   0x7 LB: > { %s2025_s18 = sadd.s32 4294967295, %s2567_s17   ;;  %s2026_s19 = sadd.s32 4294967294, %s2567_s17   ;;  %s2567_s17 = sphi %s2609_s17, %s20_s17   ;;  %s2563_s16 = sphi %s2607_s16, %s3026_s16   ;;  %s2559_s15 = sphi %s2605_s15, %s3025_s15   ;;  %s2555_s14 = sphi %s2603_s14, %s3024_s14   ;;  %s2551_s13 = sphi %s2601_s13, %s3023_s13   ;;  %s2547_s12 = sphi %s2599_s12, %s3022_s12  }
   0x8   : > { %p61_p0 = scmp.ne.s32.totalorder %s2551_s13, %s2547_s12  ;;  %p2633_p1 = scmp.eq.s32.totalorder %s2025_s18, 0 }
   0x9   : > { %p2637_p2 = scmp.eq.s32.totalorder %s2025_s18, 1  ;;  %p147_p3 = scmp.eq.s32.totalorder %s2026_s19, 1 }
   0xa   : > { %p2643_p4 = por %p2633_p1, %p61_p0  ;;  %p2027_p5 = scmp.ge.s32.totalorder %s2567_s17, 1 }
   0xb   : > { %p2648_p6 = por %p147_p3, %p61_p0  ;;  %p154_p7 = scmp.lt.s32.totalorder %s2567_s17, 3 }
   0xc   : > { %s3012_s22 = scalar_select %p2643_p4, 1, 0 }
   0xd   : > { %s3013_s23 = scalar_select %p2648_p6, 1, 0 }
   0xe   : > { %p2653_p8 = pnand %p2027_p5, %p154_p7  ;;  %s2569_s25 = smov [#allocation6]  }
   0xf   : > { %s172_s26 = sshll.u32 %s2569_s25, 4  ;;  %s39_s28 = sadd.s32 1, %s2563_s16  ;;  %s173_s26 = int_to_ptr.vmem [resolvable:$true] %s172_s26 }
  0x10   : > { %p2309_p9 = pneg %p2653_p8  ;;  %s2440_s29 = scalar_lea.vmem %s173_s26, 3072 }
  0x11   : > { %p2441_p13 = scmp.ne.s32.totalorder %s173_s26, %s2440_s29  ;;  %p2448_p5 = scmp.lt.s32.totalorder %s173_s26, %s173_s26 }
  0x12   : > { %p2662_p11 = pnand %p2309_p9, %p2633_p1  ;;  %p2449_p7 = scmp.lt.s32.totalorder %s2440_s29, %s2440_s29 }
  0x14   : > { %p2431_p12 = pneg %p2662_p11  ;;  %p2450_p6 = por %p2449_p7, %p2448_p5 }
  0x16   : > { %p2443_p0 = pnand %p2441_p13, %p2431_p12 }
  0x18   : > { %p2444_p3 = pneg %p2443_p0 }
  0x1a   : > { %p2451_p4 = pnand %p2450_p6, %p2444_p3 }
  0x1c   : > { %2454 = shalt.err (!%p2451_p4)
}
  0x1d   : > { %s2570_s30 = smov 192   ;;  %s2571_s4 = smov 12  }
  0x1e   : > { %2312 = dma.hbm_to_vmem [thread:$0]  (!%p2662_p11), %s3006_s1, 3072, %s173_s26, [#allocation7], %s2570_s30, %s2570_s30, %s2571_s4  }
  0x1f   : > { %p41_p6 = scmp.ge.s32.totalorder %s39_s28, 2  ;;  %s48_s7 = sadd.s32 1, %s2555_s14 }
  0x20   : > { %p55_p4 = scmp.ne.s32.totalorder %s2555_s14, %s2551_s13  ;;  %p56_p9 = scmp.eq.s32.totalorder %s2567_s17, 0 }
  0x21   : > { %s3028_s28 = smov (%p41_p6, %s39_s28), 0  ;;  %p2322_p0 = scmp.lt.s32.totalorder %s2567_s17, 2 }
  0x22   : > { %p2680_p12 = por %p56_p9, %p55_p4  ;;  %p2686_p13 = por %p2637_p2, %p55_p4 }
  0x23   : > { %s43_s10 = ssub.s32 %s2563_s16, %s3028_s28  ;;  %s194_s11 = sand.u32 1, %s2555_s14  }
  0x24   : > { %p46_p11 = scmp.eq.s32.totalorder %s43_s10, 0  ;;  %s2031_s18 = sshll.u32 %s194_s11, 7 }
  0x25   : > { %s2146_s25 = sshll.u32 %s2563_s16, 11  ;;  %s198_s30 = scalar_lea.vmem [#allocation3], %s2031_s18 }
  0x26   : > { %s2695_s19 = scalar_select %p46_p11, %s2555_s14, %s48_s7  }
  0x27   : > { %s205_s29 = scalar_lea.hbm %s3005_s0, %s2146_s25  ;;  %s206_s4 = sshll.u32 %s198_s30, 4  ;;  %s207_s4 = int_to_ptr.vmem [resolvable:$true] %s206_s4 }
  0x28   : > { %p2703_p2 = pnand %p2322_p0, %p2680_p12  ;;  %s195_s5 = scalar_lea.sflag [#allocation4], %s194_s11 }
  0x29   : > { %s2468_s6 = scalar_lea.vmem %s207_s4, 2048  ;;  %s2572_s7 = smov [#allocation3]  }
  0x2a   : > { %p2457_p3 = pneg %p2703_p2  ;;  %p2469_p5 = scmp.ne.s32.totalorder %s207_s4, %s2468_s6 }
  0x2b   : > { %s2473_s10 = sshll.u32 %s2572_s7, 4  ;;  %s2474_s10 = int_to_ptr.vmem [resolvable:$false] %s2473_s10 }
  0x2c   : > { %p2471_p7 = pnand %p2469_p5, %p2457_p3  ;;  %s2475_s25 = scalar_lea.vmem %s2474_s10, 4096 }
  0x2d   : > { %p2476_p4 = scmp.lt.s32.totalorder %s207_s4, %s2474_s10  ;;  %p2477_p9 = scmp.lt.s32.totalorder %s2475_s25, %s2468_s6 }
  0x2e   : > { %p2472_p6 = pneg %p2471_p7 }
  0x2f   : > { %p2478_p11 = por %p2477_p9, %p2476_p4 }
  0x31   : > { %p2479_p10 = pnand %p2478_p11, %p2472_p6 }
  0x33   : > { %2482 = shalt.err (!%p2479_p10)
}
  0x34   : > { %s2573_s8 = smov 64   ;;  %s2574_s18 = smov 4  }
  0x35   : > { %2316 = dma.hbm_to_vmem [thread:$0]  (!%p2703_p2), %s205_s29, 2048, %s207_s4, %s195_s5, %s2573_s8, %s2573_s8, %s2574_s18  }
  0x36   : > { %218 = sbr.rel (%p2653_p8) target bundleno = 401 (0x191), region = 32  ;;  %s2714_s11 = sand.u32 (!%p2653_p8), 1, %s2551_s13  }
  0x37   : > { %s2035_s26 = sshll.u32 (!%p2653_p8), %s2714_s11, 7  ;;  %s221_s27 = scalar_lea.sflag (!%p2653_p8), [#allocation4], %s2714_s11 }
  0x38   : > { %s2718_s30 = scalar_lea.vmem (!%p2653_p8), [#allocation3], %s2035_s26  ;;  %p3019_p12 = scmp.ne.s32.totalorder (!%p2653_p8), %s3012_s22, 0 }
  0x3b   : > { %2534 = dma.done.wait (%p3019_p12), %s221_s27, 2048  }
  0x3c   : > { %2536 = vsyncadd (%p3019_p12), %s221_s27, 4294965248 }
  0x3d   : > { %2538 = dma.done.wait (%p2633_p1), [#allocation7], 3072  }
  0x3e   : > { %2540 = vsyncadd (%p2633_p1), [#allocation7], 4294964224  ;;  %v2575_v0 = vmov 0   ;;  %v2381_v1 = vld [vmem:[#allocation6 + $0xac] ss:$12 sps:$4 sm:$0xff]   ;;  %v2405_v18 = vld [vmem:[%s2718_s30] sm:$0xff]   ;;  %v1397_v41 = vlaneseq }
  0x3f   : > { %782 = vmatprep.mubr.bf16.mxu0 %v2575_v0  ;;  %902 = vmatprep.mubr.bf16.mxu1 %v2575_v0  ;;  %v2383_v2 = vld [vmem:[#allocation6 + $0xa8] ss:$12 sps:$4 sm:$0xff]   ;;  %v2386_v4 = vld [vmem:[#allocation6 + $0x90] ss:$12 sps:$4 sm:$0xff]   ;;  %v2389_v6 = vld [vmem:[#allocation6 + $0x78] ss:$12 sps:$4 sm:$0xff]  }
  0x40   : > { %750 = vmatprep.subr.bf16.mxu0 %v2381_v1  ;;  %2283 = vmatprep.subr.bf16.mxu1 %v2381_v1  ;;  %v2384_v3 = vld [vmem:[#allocation6 + $0x94] ss:$12 sps:$4 sm:$0xff]   ;;  %v2387_v5 = vld [vmem:[#allocation6 + $0x7c] ss:$12 sps:$4 sm:$0xff]   ;;  %v2390_v7 = vld [vmem:[#allocation6 + $0x64] ss:$12 sps:$4 sm:$0xff]  }
  0x41   : > { %751 = vmatpush1.bf16.msra.mxu0 %v2383_v2  ;;  %2291 = vmatpush1.bf16.msra.mxu1 %v2383_v2  ;;  %v2392_v8 = vld [vmem:[#allocation6 + $0x60] ss:$12 sps:$4 sm:$0xff]   ;;  %v2395_v10 = vld [vmem:[#allocation6 + $0x48] ss:$12 sps:$4 sm:$0xff]   ;;  %v2398_v12 = vld [vmem:[#allocation6 + $0x30] ss:$12 sps:$4 sm:$0xff]  }
  0x42   : > { %752 = vmatprep.subr.bf16.mxu0 %v2384_v3  ;;  %2284 = vmatprep.subr.bf16.mxu1 %v2384_v3  ;;  %v2393_v9 = vld [vmem:[#allocation6 + $0x4c] ss:$12 sps:$4 sm:$0xff]   ;;  %v2396_v11 = vld [vmem:[#allocation6 + $0x34] ss:$12 sps:$4 sm:$0xff]   ;;  %v2399_v13 = vld [vmem:[#allocation6 + $0x1c] ss:$12 sps:$4 sm:$0xff]  }
  0x43   : > { %v2401_v14 = vld [vmem:[#allocation6 + $0x18] ss:$12 sps:$4 sm:$0xff]   ;;  %v2404_v16 = vld [vmem:[#allocation6] ss:$12 sps:$4 sm:$0xff]   ;;  %v2407_v17 = vld [vmem:[#allocation6 + $0xb0] ss:$12 sps:$4 sm:$0xff]  }
  0x44   : > { %v2402_v15 = vld [vmem:[#allocation6 + $0x4] ss:$12 sps:$4 sm:$0xff]   ;;  %v2411_v21 = vld [vmem:[#allocation6 + $0x80] ss:$12 sps:$4 sm:$0xff]   ;;  %v2412_v24 = vld [vmem:[#allocation6 + $0x68] ss:$12 sps:$4 sm:$0xff]  }
  0x45   : > { %753 = vmatpush1.bf16.msra.mxu0 %v2386_v4  ;;  %2292 = vmatpush1.bf16.msra.mxu1 %v2386_v4  ;;  %v2732_v19 = vld [vmem:[%s2718_s30 + $0x60] sm:$0xff]   ;;  %v2409_v22 = vld [vmem:[%s2718_s30 + $0x8] sm:$0xff]   ;;  %v2415_v25 = vld [vmem:[#allocation6 + $0x50] ss:$12 sps:$4 sm:$0xff]   ;;  %v2768_v42 = vshrl.u32 %v1397_v41, 7  ;;  %s2299_s24 = smul.u32 384, %s2714_s11 }
  0x46   : > { %754 = vmatprep.subr.bf16.mxu0 %v2387_v5  ;;  %2285 = vmatprep.subr.bf16.mxu1 %v2387_v5  ;;  %v2408_v20 = vld [vmem:[#allocation6 + $0x98] ss:$12 sps:$4 sm:$0xff]   ;;  %v2739_v23 = vld [vmem:[%s2718_s30 + $0x68] sm:$0xff]   ;;  %v2413_v26 = vld [vmem:[%s2718_s30 + $0x10] sm:$0xff]   ;;  %s2300_s4 = smul.u32 6144, %s2559_s15  ;;  %s1893_s7 = scalar_lea.sflag [#allocation5], %s2714_s11 }
  0x47   : > { %v2414_v27 = vld [vmem:[%s2718_s30 + $0x70] sm:$0xff]   ;;  %v2416_v28 = vld [vmem:[#allocation6 + $0x38] ss:$12 sps:$4 sm:$0xff]   ;;  %v2419_v29 = vld [vmem:[#allocation6 + $0x20] ss:$12 sps:$4 sm:$0xff]   ;;  %v1399_v43 = vsub.s32 0, %v2768_v42 }
  0x48   : > { %v2417_v30 = vld [vmem:[%s2718_s30 + $0x18] sm:$0xff]   ;;  %v2420_v32 = vld [vmem:[#allocation6 + $0x8] ss:$12 sps:$4 sm:$0xff]   ;;  %v2421_v33 = vld [vmem:[%s2718_s30 + $0x20] sm:$0xff]   ;;  %v1403_v44 = vsub.s32 1, %v2768_v42  ;;  %s2788_s29 = scalar_lea.vmem [#allocation8], %s2299_s24  ;;  %s2952_s6 = scalar_lea.hbm %s3008_s3, %s2300_s4 }
  0x49   : > { %755 = vmatpush1.bf16.msra.mxu0 %v2389_v6  ;;  %2293 = vmatpush1.bf16.msra.mxu1 %v2389_v6  ;;  %v2418_v31 = vld [vmem:[%s2718_s30 + $0x78] sm:$0xff]   ;;  %v2422_v34 = vld [vmem:[%s2718_s30 + $0x28] sm:$0xff]   ;;  %v2423_v35 = vld [vmem:[%s2718_s30 + $0x30] sm:$0xff]   ;;  %s1909_s21 = sshll.u32 %s2788_s29, 4  ;;  %s2576_s25 = smov [#allocation8]   ;;  %s2954_s21 = int_to_ptr.vmem [resolvable:$true] %s1909_s21 }
  0x4a   : > { %756 = vmatprep.subr.bf16.mxu0 %v2390_v7  ;;  %2286 = vmatprep.subr.bf16.mxu1 %v2390_v7  ;;  %v2424_v36 = vld [vmem:[%s2718_s30 + $0x38] sm:$0xff]   ;;  %v2425_v37 = vld [vmem:[%s2718_s30 + $0x40] sm:$0xff]   ;;  %v2426_v38 = vld [vmem:[%s2718_s30 + $0x48] sm:$0xff]   ;;  %s2483_s10 = scalar_lea.vmem %s2954_s21, 6144  ;;  %s2487_s8 = sshll.u32 %s2576_s25, 4  ;;  %s2488_s8 = int_to_ptr.vmem [resolvable:$false] %s2487_s8 }
  0x4b   : > { %v2427_v39 = vld [vmem:[%s2718_s30 + $0x50] sm:$0xff]   ;;  %v2428_v40 = vld [vmem:[%s2718_s30 + $0x58] sm:$0xff]   ;;  %v2775_v45 = vld [vmem:[%s3007_s2] sm:$0x7]  ;;  %p2484_p1 = scmp.ne.s32.totalorder %s2954_s21, %s2483_s10  ;;  %s2489_s18 = scalar_lea.vmem %s2488_s8, 12288 }
  0x4c   : > { %v2778_v46 = vrot.slane %v2775_v45, %v1399_v43  ;;  %v2781_v47 = vrot.slane %v2775_v45, %v1403_v44  ;;  %p2490_p0 = scmp.lt.s32.totalorder %s2954_s21, %s2488_s8  ;;  %p2491_p2 = scmp.lt.s32.totalorder %s2489_s18, %s2483_s10 }
  0x4d   : > { %757 = vmatpush1.bf16.msra.mxu0 %v2392_v8  ;;  %2294 = vmatpush1.bf16.msra.mxu1 %v2392_v8  ;;  %p2485_p8 = pnand %p2484_p1, %p2686_p13 }
  0x4e   : > { %758 = vmatprep.subr.bf16.mxu0 %v2393_v9  ;;  %2287 = vmatprep.subr.bf16.mxu1 %v2393_v9  ;;  %p2492_p3 = por %p2491_p2, %p2490_p0 }
  0x4f   : > { %p2486_p10 = pneg %p2485_p8 }
  0x51   : > { %759 = vmatpush1.bf16.msra.mxu0 %v2395_v10  ;;  %2295 = vmatpush1.bf16.msra.mxu1 %v2395_v10  ;;  %p2493_p5 = pnand %p2492_p3, %p2486_p10 }
  0x52   : > { %760 = vmatprep.subr.bf16.mxu0 %v2396_v11  ;;  %2288 = vmatprep.subr.bf16.mxu1 %v2396_v11 }
  0x55   : > { %761 = vmatpush1.bf16.msra.mxu0 %v2398_v12  ;;  %2296 = vmatpush1.bf16.msra.mxu1 %v2398_v12 }
  0x56   : > { %762 = vmatprep.subr.bf16.mxu0 %v2399_v13  ;;  %2289 = vmatprep.subr.bf16.mxu1 %v2399_v13 }
  0x59   : > { %763 = vmatpush1.bf16.msra.mxu0 %v2401_v14  ;;  %2297 = vmatpush1.bf16.msra.mxu1 %v2401_v14 }
  0x5a   : > { %764 = vmatprep.subr.bf16.mxu0 %v2402_v15  ;;  %2290 = vmatprep.subr.bf16.mxu1 %v2402_v15 }
  0x5d   : > { %765 = vmatpush1.bf16.msra.mxu0 %v2404_v16  ;;  %2298 = vmatpush1.bf16.msra.mxu1 %v2404_v16 }
  0x5e   : > { %2235 = vmatprep.subr.bf16.mxu1 %v2407_v17 }
  0x60   : > { %783 = vmatmul.mubr.bf16.vlgmr.msra.gmra.mxu0 %v2405_v18  ;;  %903 = vmatmul.mubr.bf16.vlgmr.msra.gmra.mxu1 %v2732_v19 }
  0x61   : > { %2236 = vmatpush3.bf16.msra.mxu1 %v2407_v17  ;;  %792 = vmatprep.mubr.bf16.mxu0 %v2575_v0 }
  0x62   : > { %2237 = vmatprep.subr.bf16.mxu1 %v2408_v20  ;;  %912 = vmatprep.mubr.bf16.mxu1 %v2575_v0 }
  0x65   : > { %2238 = vmatpush3.bf16.msra.mxu1 %v2408_v20 }
  0x66   : > { %2239 = vmatprep.subr.bf16.mxu1 %v2411_v21 }
  0x68   : > { %793 = vmatmul.mubr.bf16.gmra.mxu0 %v2409_v22  ;;  %913 = vmatmul.mubr.bf16.gmra.mxu1 %v2739_v23 }
  0x69   : > { %2240 = vmatpush3.bf16.msra.mxu1 %v2411_v21  ;;  %802 = vmatprep.mubr.bf16.mxu0 %v2575_v0 }
  0x6a   : > { %2241 = vmatprep.subr.bf16.mxu1 %v2412_v24  ;;  %922 = vmatprep.mubr.bf16.mxu1 %v2575_v0 }
  0x6d   : > { %2242 = vmatpush3.bf16.msra.mxu1 %v2412_v24 }
  0x6e   : > { %2243 = vmatprep.subr.bf16.mxu1 %v2415_v25 }
  0x70   : > { %803 = vmatmul.mubr.bf16.gmra.mxu0 %v2413_v26  ;;  %923 = vmatmul.mubr.bf16.gmra.mxu1 %v2414_v27 }
  0x71   : > { %2244 = vmatpush3.bf16.msra.mxu1 %v2415_v25  ;;  %812 = vmatprep.mubr.bf16.mxu0 %v2575_v0 }
  0x72   : > { %2245 = vmatprep.subr.bf16.mxu1 %v2416_v28  ;;  %932 = vmatprep.mubr.bf16.mxu1 %v2575_v0 }
  0x75   : > { %2246 = vmatpush3.bf16.msra.mxu1 %v2416_v28 }
  0x76   : > { %2247 = vmatprep.subr.bf16.mxu1 %v2419_v29 }
  0x78   : > { %813 = vmatmul.mubr.bf16.gmra.mxu0 %v2417_v30  ;;  %933 = vmatmul.mubr.bf16.gmra.mxu1 %v2418_v31 }
  0x79   : > { %2248 = vmatpush3.bf16.msra.mxu1 %v2419_v29  ;;  %822 = vmatprep.mubr.bf16.mxu0 %v2575_v0 }
  0x7a   : > { %2249 = vmatprep.subr.bf16.mxu1 %v2420_v32  ;;  %2251 = vmatprep.mubr.bf16.mxu1 %v2405_v18 }
  0x7d   : > { %2250 = vmatpush3.bf16.msra.mxu1 %v2420_v32 }
  0x80   : > { %823 = vmatmul.mubr.bf16.gmra.mxu0 %v2421_v33  ;;  %2252 = vmatmul.mubr.bf16.vlgmr.msra.gmra.mxu1 %v2409_v22 }
  0x81   : > { %832 = vmatprep.mubr.bf16.mxu0 %v2575_v0  ;;  %2255 = vmatprep.mubr.bf16.mxu1 %v2413_v26 }
  0x88   : > { %833 = vmatmul.mubr.bf16.gmra.mxu0 %v2422_v34  ;;  %2256 = vmatmul.mubr.bf16.gmra.mxu1 %v2417_v30 }
  0x89   : > { %842 = vmatprep.mubr.bf16.mxu0 %v2575_v0  ;;  %2259 = vmatprep.mubr.bf16.mxu1 %v2421_v33 }
  0x90   : > { %843 = vmatmul.mubr.bf16.gmra.mxu0 %v2423_v35  ;;  %2260 = vmatmul.mubr.bf16.gmra.mxu1 %v2422_v34 }
  0x91   : > { %852 = vmatprep.mubr.bf16.mxu0 %v2575_v0  ;;  %2263 = vmatprep.mubr.bf16.mxu1 %v2423_v35 }
  0x98   : > { %853 = vmatmul.mubr.bf16.gmra.mxu0 %v2424_v36  ;;  %2264 = vmatmul.mubr.bf16.gmra.mxu1 %v2424_v36 }
  0x99   : > { %862 = vmatprep.mubr.bf16.mxu0 %v2575_v0  ;;  %2267 = vmatprep.mubr.bf16.mxu1 %v2425_v37 }
  0xa0   : > { %863 = vmatmul.mubr.bf16.gmra.mxu0 %v2425_v37  ;;  %2268 = vmatmul.mubr.bf16.gmra.mxu1 %v2426_v38 }
  0xa1   : > { %872 = vmatprep.mubr.bf16.mxu0 %v2575_v0  ;;  %2271 = vmatprep.mubr.bf16.mxu1 %v2427_v39 }
  0xa8   : > { %873 = vmatmul.mubr.bf16.gmra.mxu0 %v2426_v38  ;;  %2272 = vmatmul.mubr.bf16.gmra.mxu1 %v2428_v40 }
  0xa9   : > { %882 = vmatprep.mubr.bf16.mxu0 %v2575_v0  ;;  %2275 = vmatprep.mubr.bf16.mxu1 %v2732_v19 }
  0xb0   : > { %883 = vmatmul.mubr.bf16.gmra.mxu0 %v2427_v39  ;;  %2276 = vmatmul.mubr.bf16.gmra.mxu1 %v2739_v23 }
  0xb1   : > { %892 = vmatprep.mubr.bf16.mxu0 %v2575_v0  ;;  %2279 = vmatprep.mubr.bf16.mxu1 %v2414_v27 }
  0xb8   : > { %893 = vmatmul.mubr.bf16.gmra.mxu0 %v2428_v40  ;;  %2280 = vmatmul.mubr.bf16.gmra.mxu1 %v2418_v31 }
 0x120   : > { %v784_v48 = vpop.f32.mrf.mxu0  ;;  %v904_v49 = vpop.f32.mrf.mxu1 }
 0x121   : > { %v1412_v52 = vadd.f32 %v2778_v46, %v784_v48  ;;  %v1484_v53 = vadd.f32 %v2778_v46, %v904_v49 }
 0x122   : > { %v786_v50 = vpop.f32.mrf.mxu0  ;;  %v906_v51 = vpop.f32.mrf.mxu1 }
 0x123   : > { %v1413_v54 = vadd.f32 %v2781_v47, %v786_v50  ;;  %v1485_v55 = vadd.f32 %v2781_v47, %v906_v51  ;;  %v1407_v50 = vsub.s32 2, %v2768_v42 }
 0x124   : > { %v788_v56 = vpop.f32.mrf.mxu0  ;;  %v908_v57 = vpop.f32.mrf.mxu1 }
 0x125   : > { %v2147_v58 = vpack.c.bf16 %v1413_v54, %v1412_v52  ;;  %v2195_v59 = vpack.c.bf16 %v1485_v55, %v1484_v53  ;;  %v1415_v62 = vadd.f32 %v2778_v46, %v788_v56  ;;  %v1487_v63 = vadd.f32 %v2778_v46, %v908_v57 }
 0x126   : > { %v790_v60 = vpop.f32.mrf.mxu0  ;;  %v910_v61 = vpop.f32.mrf.mxu1  ;;  %v2828_v42 = vrot.slane %v2775_v45, %v1407_v50 }
 0x127   : > { %1828 = vst [vmem:[%s2788_s29] sm:$0xff] %v2147_v58  ;;  %1876 = vst [vmem:[%s2788_s29 + $0x120] sm:$0xff] %v2195_v59  ;;  %v1416_v0 = vadd.f32 %v2781_v47, %v790_v60  ;;  %v1488_v1 = vadd.f32 %v2781_v47, %v910_v61 }
 0x128   : > { %v794_v2 = vpop.f32.mrf.mxu0  ;;  %v914_v3 = vpop.f32.mrf.mxu1 }
 0x129   : > { %v2149_v4 = vpack.c.bf16 %v1416_v0, %v1415_v62  ;;  %v2197_v5 = vpack.c.bf16 %v1488_v1, %v1487_v63  ;;  %v1418_v8 = vadd.f32 %v2778_v46, %v794_v2  ;;  %v1490_v9 = vadd.f32 %v2778_v46, %v914_v3 }
 0x12a   : > { %v796_v6 = vpop.f32.mrf.mxu0  ;;  %v916_v7 = vpop.f32.mrf.mxu1 }
 0x12b   : > { %1830 = vst [vmem:[%s2788_s29 + $0xc] sm:$0xff] %v2149_v4  ;;  %1878 = vst [vmem:[%s2788_s29 + $0x12c] sm:$0xff] %v2197_v5  ;;  %v1419_v10 = vadd.f32 %v2781_v47, %v796_v6  ;;  %v1491_v11 = vadd.f32 %v2781_v47, %v916_v7 }
 0x12c   : > { %v798_v12 = vpop.f32.mrf.mxu0  ;;  %v918_v13 = vpop.f32.mrf.mxu1 }
 0x12d   : > { %v2151_v14 = vpack.c.bf16 %v1419_v10, %v1418_v8  ;;  %v2199_v15 = vpack.c.bf16 %v1491_v11, %v1490_v9  ;;  %v1421_v18 = vadd.f32 %v2778_v46, %v798_v12  ;;  %v1493_v19 = vadd.f32 %v2778_v46, %v918_v13 }
 0x12e   : > { %v800_v16 = vpop.f32.mrf.mxu0  ;;  %v920_v17 = vpop.f32.mrf.mxu1 }
 0x12f   : > { %1832 = vst [vmem:[%s2788_s29 + $0x18] sm:$0xff] %v2151_v14  ;;  %1880 = vst [vmem:[%s2788_s29 + $0x138] sm:$0xff] %v2199_v15  ;;  %v1422_v20 = vadd.f32 %v2781_v47, %v800_v16  ;;  %v1494_v21 = vadd.f32 %v2781_v47, %v920_v17 }
 0x130   : > { %v804_v22 = vpop.f32.mrf.mxu0  ;;  %v924_v23 = vpop.f32.mrf.mxu1 }
 0x131   : > { %v2153_v24 = vpack.c.bf16 %v1422_v20, %v1421_v18  ;;  %v2201_v25 = vpack.c.bf16 %v1494_v21, %v1493_v19  ;;  %v1424_v28 = vadd.f32 %v2778_v46, %v804_v22  ;;  %v1496_v29 = vadd.f32 %v2778_v46, %v924_v23 }
 0x132   : > { %v806_v26 = vpop.f32.mrf.mxu0  ;;  %v926_v27 = vpop.f32.mrf.mxu1 }
 0x133   : > { %1834 = vst [vmem:[%s2788_s29 + $0x24] sm:$0xff] %v2153_v24  ;;  %1882 = vst [vmem:[%s2788_s29 + $0x144] sm:$0xff] %v2201_v25  ;;  %v1425_v30 = vadd.f32 %v2781_v47, %v806_v26  ;;  %v1497_v31 = vadd.f32 %v2781_v47, %v926_v27 }
 0x134   : > { %v808_v32 = vpop.f32.mrf.mxu0  ;;  %v928_v33 = vpop.f32.mrf.mxu1 }
 0x135   : > { %v2155_v34 = vpack.c.bf16 %v1425_v30, %v1424_v28  ;;  %v2203_v35 = vpack.c.bf16 %v1497_v31, %v1496_v29  ;;  %v1427_v38 = vadd.f32 %v2778_v46, %v808_v32  ;;  %v1499_v39 = vadd.f32 %v2778_v46, %v928_v33 }
 0x136   : > { %v810_v36 = vpop.f32.mrf.mxu0  ;;  %v930_v37 = vpop.f32.mrf.mxu1 }
 0x137   : > { %1836 = vst [vmem:[%s2788_s29 + $0x30] sm:$0xff] %v2155_v34  ;;  %1884 = vst [vmem:[%s2788_s29 + $0x150] sm:$0xff] %v2203_v35  ;;  %v1428_v40 = vadd.f32 %v2781_v47, %v810_v36  ;;  %v1500_v41 = vadd.f32 %v2781_v47, %v930_v37 }
 0x138   : > { %v814_v43 = vpop.f32.mrf.mxu0  ;;  %v934_v44 = vpop.f32.mrf.mxu1 }
 0x139   : > { %v2157_v48 = vpack.c.bf16 %v1428_v40, %v1427_v38  ;;  %v2205_v49 = vpack.c.bf16 %v1500_v41, %v1499_v39  ;;  %v1430_v53 = vadd.f32 %v2778_v46, %v814_v43  ;;  %v1502_v54 = vadd.f32 %v2778_v46, %v934_v44 }
 0x13a   : > { %v816_v51 = vpop.f32.mrf.mxu0  ;;  %v936_v52 = vpop.f32.mrf.mxu1 }
 0x13b   : > { %1838 = vst [vmem:[%s2788_s29 + $0x3c] sm:$0xff] %v2157_v48  ;;  %1886 = vst [vmem:[%s2788_s29 + $0x15c] sm:$0xff] %v2205_v49  ;;  %v1431_v55 = vadd.f32 %v2781_v47, %v816_v51  ;;  %v1503_v56 = vadd.f32 %v2781_v47, %v936_v52 }
 0x13c   : > { %v818_v57 = vpop.f32.mrf.mxu0  ;;  %v938_v58 = vpop.f32.mrf.mxu1 }
 0x13d   : > { %v2159_v59 = vpack.c.bf16 %v1431_v55, %v1430_v53  ;;  %v2207_v60 = vpack.c.bf16 %v1503_v56, %v1502_v54  ;;  %v1433_v63 = vadd.f32 %v2778_v46, %v818_v57  ;;  %v1505_v0 = vadd.f32 %v2778_v46, %v938_v58 }
 0x13e   : > { %v820_v61 = vpop.f32.mrf.mxu0  ;;  %v940_v62 = vpop.f32.mrf.mxu1 }
 0x13f   : > { %1840 = vst [vmem:[%s2788_s29 + $0x48] sm:$0xff] %v2159_v59  ;;  %1888 = vst [vmem:[%s2788_s29 + $0x168] sm:$0xff] %v2207_v60  ;;  %v1434_v1 = vadd.f32 %v2781_v47, %v820_v61  ;;  %v1506_v2 = vadd.f32 %v2781_v47, %v940_v62 }
 0x140   : > { %v824_v3 = vpop.f32.mrf.mxu0  ;;  %v2253_v4 = vpop.f32.mrf.mxu1 }
 0x141   : > { %v2161_v5 = vpack.c.bf16 %v1434_v1, %v1433_v63  ;;  %v2209_v45 = vpack.c.bf16 %v1506_v2, %v1505_v0  ;;  %v1420_v6 = vadd.f32 %v2253_v4, %v2828_v42  ;;  %v1436_v9 = vadd.f32 %v2778_v46, %v824_v3 }
 0x142   : > { %v826_v7 = vpop.f32.mrf.mxu0  ;;  %v977_v8 = vpop.f32.mrf.mxu1 }
 0x143   : > { %1842 = vst [vmem:[%s2788_s29 + $0x54] sm:$0xff] %v2161_v5  ;;  %1890 = vst [vmem:[%s2788_s29 + $0x174] sm:$0xff] %v2209_v45  ;;  %v2152_v10 = vpack.c.bf16 %v1420_v6, %v1420_v6  ;;  %v1437_v11 = vadd.f32 %v2781_v47, %v826_v7  ;;  %v1414_v12 = vadd.f32 %v2828_v42, %v977_v8 }
 0x144   : > { %v828_v13 = vpop.f32.mrf.mxu0  ;;  %v2254_v14 = vpop.f32.mrf.mxu1 }
 0x145   : > { %1833 = vst [vmem:[%s2788_s29 + $0x20] sm:$0xf] %v2152_v10  ;;  %v2163_v15 = vpack.c.bf16 %v1437_v11, %v1436_v9  ;;  %v2148_v16 = vpack.c.bf16 %v1414_v12, %v1414_v12  ;;  %v1423_v17 = vadd.f32 %v2254_v14, %v2828_v42  ;;  %v1439_v20 = vadd.f32 %v2778_v46, %v828_v13 }
 0x146   : > { %v830_v18 = vpop.f32.mrf.mxu0  ;;  %v980_v19 = vpop.f32.mrf.mxu1 }
 0x147   : > { %1844 = vst [vmem:[%s2788_s29 + $0x60] sm:$0xff] %v2163_v15  ;;  %1829 = vst [vmem:[%s2788_s29 + $0x8] sm:$0xf] %v2148_v16  ;;  %v2154_v21 = vpack.c.bf16 %v1423_v17, %v1423_v17  ;;  %v1440_v22 = vadd.f32 %v2781_v47, %v830_v18  ;;  %v1417_v23 = vadd.f32 %v2828_v42, %v980_v19 }
 0x148   : > { %v834_v24 = vpop.f32.mrf.mxu0  ;;  %v2257_v25 = vpop.f32.mrf.mxu1 }
 0x149   : > { %1835 = vst [vmem:[%s2788_s29 + $0x2c] sm:$0xf] %v2154_v21  ;;  %v2165_v26 = vpack.c.bf16 %v1440_v22, %v1439_v20  ;;  %v2150_v27 = vpack.c.bf16 %v1417_v23, %v1417_v23  ;;  %v1432_v28 = vadd.f32 %v2257_v25, %v2828_v42  ;;  %v1442_v31 = vadd.f32 %v2778_v46, %v834_v24 }
 0x14a   : > { %v836_v29 = vpop.f32.mrf.mxu0  ;;  %v993_v30 = vpop.f32.mrf.mxu1 }
 0x14b   : > { %1846 = vst [vmem:[%s2788_s29 + $0x6c] sm:$0xff] %v2165_v26  ;;  %1831 = vst [vmem:[%s2788_s29 + $0x14] sm:$0xf] %v2150_v27  ;;  %v2160_v32 = vpack.c.bf16 %v1432_v28, %v1432_v28  ;;  %v1443_v33 = vadd.f32 %v2781_v47, %v836_v29  ;;  %v1426_v34 = vadd.f32 %v2828_v42, %v993_v30 }
 0x14c   : > { %v838_v35 = vpop.f32.mrf.mxu0  ;;  %v2258_v36 = vpop.f32.mrf.mxu1 }
 0x14d   : > { %1841 = vst [vmem:[%s2788_s29 + $0x50] sm:$0xf] %v2160_v32  ;;  %v2167_v37 = vpack.c.bf16 %v1443_v33, %v1442_v31  ;;  %v2156_v38 = vpack.c.bf16 %v1426_v34, %v1426_v34  ;;  %v1435_v39 = vadd.f32 %v2258_v36, %v2828_v42  ;;  %v1445_v43 = vadd.f32 %v2778_v46, %v838_v35 }
 0x14e   : > { %v840_v40 = vpop.f32.mrf.mxu0  ;;  %v996_v41 = vpop.f32.mrf.mxu1 }
 0x14f   : > { %1848 = vst [vmem:[%s2788_s29 + $0x78] sm:$0xff] %v2167_v37  ;;  %1837 = vst [vmem:[%s2788_s29 + $0x38] sm:$0xf] %v2156_v38  ;;  %v2162_v44 = vpack.c.bf16 %v1435_v39, %v1435_v39  ;;  %v1446_v48 = vadd.f32 %v2781_v47, %v840_v40  ;;  %v1429_v49 = vadd.f32 %v2828_v42, %v996_v41 }
 0x150   : > { %v844_v50 = vpop.f32.mrf.mxu0  ;;  %v2261_v51 = vpop.f32.mrf.mxu1 }
 0x151   : > { %1843 = vst [vmem:[%s2788_s29 + $0x5c] sm:$0xf] %v2162_v44  ;;  %v2169_v52 = vpack.c.bf16 %v1446_v48, %v1445_v43  ;;  %v2158_v53 = vpack.c.bf16 %v1429_v49, %v1429_v49  ;;  %v1444_v54 = vadd.f32 %v2261_v51, %v2828_v42  ;;  %v1448_v57 = vadd.f32 %v2778_v46, %v844_v50 }
 0x152   : > { %v846_v55 = vpop.f32.mrf.mxu0  ;;  %v1009_v56 = vpop.f32.mrf.mxu1 }
 0x153   : > { %1850 = vst [vmem:[%s2788_s29 + $0x84] sm:$0xff] %v2169_v52  ;;  %1839 = vst [vmem:[%s2788_s29 + $0x44] sm:$0xf] %v2158_v53  ;;  %v2168_v58 = vpack.c.bf16 %v1444_v54, %v1444_v54  ;;  %v1449_v59 = vadd.f32 %v2781_v47, %v846_v55  ;;  %v1438_v60 = vadd.f32 %v2828_v42, %v1009_v56 }
 0x154   : > { %v848_v61 = vpop.f32.mrf.mxu0  ;;  %v2262_v62 = vpop.f32.mrf.mxu1 }
 0x155   : > { %1849 = vst [vmem:[%s2788_s29 + $0x80] sm:$0xf] %v2168_v58  ;;  %v2171_v63 = vpack.c.bf16 %v1449_v59, %v1448_v57  ;;  %v2164_v0 = vpack.c.bf16 %v1438_v60, %v1438_v60  ;;  %v1447_v1 = vadd.f32 %v2262_v62, %v2828_v42  ;;  %v1451_v4 = vadd.f32 %v2778_v46, %v848_v61 }
 0x156   : > { %v850_v2 = vpop.f32.mrf.mxu0  ;;  %v1012_v3 = vpop.f32.mrf.mxu1 }
 0x157   : > { %1852 = vst [vmem:[%s2788_s29 + $0x90] sm:$0xff] %v2171_v63  ;;  %1845 = vst [vmem:[%s2788_s29 + $0x68] sm:$0xf] %v2164_v0  ;;  %v2170_v5 = vpack.c.bf16 %v1447_v1, %v1447_v1  ;;  %v1452_v45 = vadd.f32 %v2781_v47, %v850_v2  ;;  %v1441_v6 = vadd.f32 %v2828_v42, %v1012_v3 }
 0x158   : > { %v854_v7 = vpop.f32.mrf.mxu0  ;;  %v2265_v8 = vpop.f32.mrf.mxu1 }
 0x159   : > { %1851 = vst [vmem:[%s2788_s29 + $0x8c] sm:$0xf] %v2170_v5  ;;  %v2173_v9 = vpack.c.bf16 %v1452_v45, %v1451_v4  ;;  %v2166_v10 = vpack.c.bf16 %v1441_v6, %v1441_v6  ;;  %v1456_v11 = vadd.f32 %v2265_v8, %v2828_v42  ;;  %v1454_v14 = vadd.f32 %v2778_v46, %v854_v7 }
 0x15a   : > { %v856_v12 = vpop.f32.mrf.mxu0  ;;  %v1025_v13 = vpop.f32.mrf.mxu1 }
 0x15b   : > { %1854 = vst [vmem:[%s2788_s29 + $0x9c] sm:$0xff] %v2173_v9  ;;  %1847 = vst [vmem:[%s2788_s29 + $0x74] sm:$0xf] %v2166_v10  ;;  %v2176_v15 = vpack.c.bf16 %v1456_v11, %v1456_v11  ;;  %v1455_v16 = vadd.f32 %v2781_v47, %v856_v12  ;;  %v1450_v17 = vadd.f32 %v2828_v42, %v1025_v13 }
 0x15c   : > { %v858_v18 = vpop.f32.mrf.mxu0  ;;  %v2266_v19 = vpop.f32.mrf.mxu1 }
 0x15d   : > { %1857 = vst [vmem:[%s2788_s29 + $0xb0] sm:$0xf] %v2176_v15  ;;  %v2175_v20 = vpack.c.bf16 %v1455_v16, %v1454_v14  ;;  %v2172_v21 = vpack.c.bf16 %v1450_v17, %v1450_v17  ;;  %v1459_v22 = vadd.f32 %v2266_v19, %v2828_v42  ;;  %v1457_v25 = vadd.f32 %v2778_v46, %v858_v18 }
 0x15e   : > { %v860_v23 = vpop.f32.mrf.mxu0  ;;  %v1028_v24 = vpop.f32.mrf.mxu1 }
 0x15f   : > { %1856 = vst [vmem:[%s2788_s29 + $0xa8] sm:$0xff] %v2175_v20  ;;  %1853 = vst [vmem:[%s2788_s29 + $0x98] sm:$0xf] %v2172_v21  ;;  %v2178_v26 = vpack.c.bf16 %v1459_v22, %v1459_v22  ;;  %v1458_v27 = vadd.f32 %v2781_v47, %v860_v23  ;;  %v1453_v28 = vadd.f32 %v2828_v42, %v1028_v24 }
 0x160   : > { %v864_v29 = vpop.f32.mrf.mxu0  ;;  %v2269_v30 = vpop.f32.mrf.mxu1 }
 0x161   : > { %1859 = vst [vmem:[%s2788_s29 + $0xbc] sm:$0xf] %v2178_v26  ;;  %v2177_v31 = vpack.c.bf16 %v1458_v27, %v1457_v25  ;;  %v2174_v32 = vpack.c.bf16 %v1453_v28, %v1453_v28  ;;  %v1468_v33 = vadd.f32 %v2269_v30, %v2828_v42  ;;  %v1460_v36 = vadd.f32 %v2778_v46, %v864_v29 }
 0x162   : > { %v866_v34 = vpop.f32.mrf.mxu0  ;;  %v1041_v35 = vpop.f32.mrf.mxu1 }
 0x163   : > { %1858 = vst [vmem:[%s2788_s29 + $0xb4] sm:$0xff] %v2177_v31  ;;  %1855 = vst [vmem:[%s2788_s29 + $0xa4] sm:$0xf] %v2174_v32  ;;  %v2184_v37 = vpack.c.bf16 %v1468_v33, %v1468_v33  ;;  %v1461_v38 = vadd.f32 %v2781_v47, %v866_v34  ;;  %v1462_v39 = vadd.f32 %v2828_v42, %v1041_v35 }
 0x164   : > { %v868_v40 = vpop.f32.mrf.mxu0  ;;  %v2270_v41 = vpop.f32.mrf.mxu1 }
 0x165   : > { %1865 = vst [vmem:[%s2788_s29 + $0xe0] sm:$0xf] %v2184_v37  ;;  %v2179_v43 = vpack.c.bf16 %v1461_v38, %v1460_v36  ;;  %v2180_v44 = vpack.c.bf16 %v1462_v39, %v1462_v39  ;;  %v1471_v48 = vadd.f32 %v2270_v41, %v2828_v42  ;;  %v1463_v51 = vadd.f32 %v2778_v46, %v868_v40 }
 0x166   : > { %v870_v49 = vpop.f32.mrf.mxu0  ;;  %v1044_v50 = vpop.f32.mrf.mxu1 }
 0x167   : > { %1860 = vst [vmem:[%s2788_s29 + $0xc0] sm:$0xff] %v2179_v43  ;;  %1861 = vst [vmem:[%s2788_s29 + $0xc8] sm:$0xf] %v2180_v44  ;;  %v2186_v52 = vpack.c.bf16 %v1471_v48, %v1471_v48  ;;  %v1464_v53 = vadd.f32 %v2781_v47, %v870_v49  ;;  %v1465_v54 = vadd.f32 %v2828_v42, %v1044_v50 }
 0x168   : > { %v874_v55 = vpop.f32.mrf.mxu0  ;;  %v2273_v56 = vpop.f32.mrf.mxu1 }
 0x169   : > { %1867 = vst [vmem:[%s2788_s29 + $0xec] sm:$0xf] %v2186_v52  ;;  %v2181_v57 = vpack.c.bf16 %v1464_v53, %v1463_v51  ;;  %v2182_v58 = vpack.c.bf16 %v1465_v54, %v1465_v54  ;;  %v1480_v59 = vadd.f32 %v2273_v56, %v2828_v42  ;;  %v1466_v62 = vadd.f32 %v2778_v46, %v874_v55 }
 0x16a   : > { %v876_v60 = vpop.f32.mrf.mxu0  ;;  %v1057_v61 = vpop.f32.mrf.mxu1 }
 0x16b   : > { %1862 = vst [vmem:[%s2788_s29 + $0xcc] sm:$0xff] %v2181_v57  ;;  %1863 = vst [vmem:[%s2788_s29 + $0xd4] sm:$0xf] %v2182_v58  ;;  %v2192_v63 = vpack.c.bf16 %v1480_v59, %v1480_v59  ;;  %v1467_v0 = vadd.f32 %v2781_v47, %v876_v60  ;;  %v1474_v1 = vadd.f32 %v2828_v42, %v1057_v61 }
 0x16c   : > { %v878_v2 = vpop.f32.mrf.mxu0  ;;  %v2274_v3 = vpop.f32.mrf.mxu1 }
 0x16d   : > { %1873 = vst [vmem:[%s2788_s29 + $0x110] sm:$0xf] %v2192_v63  ;;  %v2183_v4 = vpack.c.bf16 %v1467_v0, %v1466_v62  ;;  %v2188_v5 = vpack.c.bf16 %v1474_v1, %v1474_v1  ;;  %v1483_v45 = vadd.f32 %v2274_v3, %v2828_v42  ;;  %v1469_v8 = vadd.f32 %v2778_v46, %v878_v2 }
 0x16e   : > { %v880_v6 = vpop.f32.mrf.mxu0  ;;  %v1060_v7 = vpop.f32.mrf.mxu1 }
 0x16f   : > { %1864 = vst [vmem:[%s2788_s29 + $0xd8] sm:$0xff] %v2183_v4  ;;  %1869 = vst [vmem:[%s2788_s29 + $0xf8] sm:$0xf] %v2188_v5  ;;  %v2194_v9 = vpack.c.bf16 %v1483_v45, %v1483_v45  ;;  %v1470_v10 = vadd.f32 %v2781_v47, %v880_v6  ;;  %v1477_v11 = vadd.f32 %v2828_v42, %v1060_v7 }
 0x170   : > { %v884_v12 = vpop.f32.mrf.mxu0  ;;  %v2277_v13 = vpop.f32.mrf.mxu1 }
 0x171   : > { %1875 = vst [vmem:[%s2788_s29 + $0x11c] sm:$0xf] %v2194_v9  ;;  %v2185_v14 = vpack.c.bf16 %v1470_v10, %v1469_v8  ;;  %v2190_v15 = vpack.c.bf16 %v1477_v11, %v1477_v11  ;;  %v1492_v16 = vadd.f32 %v2277_v13, %v2828_v42  ;;  %v1472_v19 = vadd.f32 %v2778_v46, %v884_v12 }
 0x172   : > { %v886_v17 = vpop.f32.mrf.mxu0  ;;  %v1073_v18 = vpop.f32.mrf.mxu1 }
 0x173   : > { %1866 = vst [vmem:[%s2788_s29 + $0xe4] sm:$0xff] %v2185_v14  ;;  %1871 = vst [vmem:[%s2788_s29 + $0x104] sm:$0xf] %v2190_v15  ;;  %v2200_v20 = vpack.c.bf16 %v1492_v16, %v1492_v16  ;;  %v1473_v21 = vadd.f32 %v2781_v47, %v886_v17  ;;  %v1486_v22 = vadd.f32 %v2828_v42, %v1073_v18 }
 0x174   : > { %v888_v23 = vpop.f32.mrf.mxu0  ;;  %v2278_v24 = vpop.f32.mrf.mxu1 }
 0x175   : > { %1881 = vst [vmem:[%s2788_s29 + $0x140] sm:$0xf] %v2200_v20  ;;  %v2187_v25 = vpack.c.bf16 %v1473_v21, %v1472_v19  ;;  %v2196_v26 = vpack.c.bf16 %v1486_v22, %v1486_v22  ;;  %v1495_v27 = vadd.f32 %v2278_v24, %v2828_v42  ;;  %v1475_v30 = vadd.f32 %v2778_v46, %v888_v23 }
 0x176   : > { %v890_v28 = vpop.f32.mrf.mxu0  ;;  %v1076_v29 = vpop.f32.mrf.mxu1 }
 0x177   : > { %1868 = vst [vmem:[%s2788_s29 + $0xf0] sm:$0xff] %v2187_v25  ;;  %1877 = vst [vmem:[%s2788_s29 + $0x128] sm:$0xf] %v2196_v26  ;;  %v2202_v31 = vpack.c.bf16 %v1495_v27, %v1495_v27  ;;  %v1476_v32 = vadd.f32 %v2781_v47, %v890_v28  ;;  %v1489_v33 = vadd.f32 %v2828_v42, %v1076_v29 }
 0x178   : > { %v894_v34 = vpop.f32.mrf.mxu0  ;;  %v2281_v35 = vpop.f32.mrf.mxu1 }
 0x179   : > { %1883 = vst [vmem:[%s2788_s29 + $0x14c] sm:$0xf] %v2202_v31  ;;  %v2189_v36 = vpack.c.bf16 %v1476_v32, %v1475_v30  ;;  %v2198_v37 = vpack.c.bf16 %v1489_v33, %v1489_v33  ;;  %v1504_v38 = vadd.f32 %v2281_v35, %v2828_v42  ;;  %v1478_v41 = vadd.f32 %v2778_v46, %v894_v34 }
 0x17a   : > { %v896_v39 = vpop.f32.mrf.mxu0  ;;  %v1089_v40 = vpop.f32.mrf.mxu1 }
 0x17b   : > { %1870 = vst [vmem:[%s2788_s29 + $0xfc] sm:$0xff] %v2189_v36  ;;  %1879 = vst [vmem:[%s2788_s29 + $0x134] sm:$0xf] %v2198_v37  ;;  %v2208_v43 = vpack.c.bf16 %v1504_v38, %v1504_v38  ;;  %v1479_v44 = vadd.f32 %v2781_v47, %v896_v39  ;;  %v1498_v48 = vadd.f32 %v2828_v42, %v1089_v40 }
 0x17c   : > { %v898_v49 = vpop.f32.mrf.mxu0  ;;  %v2282_v50 = vpop.f32.mrf.mxu1 }
 0x17d   : > { %1889 = vst [vmem:[%s2788_s29 + $0x170] sm:$0xf] %v2208_v43  ;;  %v2191_v51 = vpack.c.bf16 %v1479_v44, %v1478_v41  ;;  %v2204_v52 = vpack.c.bf16 %v1498_v48, %v1498_v48  ;;  %v1507_v53 = vadd.f32 %v2282_v50, %v2828_v42  ;;  %v1481_v56 = vadd.f32 %v2778_v46, %v898_v49 }
 0x17e   : > { %v900_v54 = vpop.f32.mrf.mxu0  ;;  %v1092_v55 = vpop.f32.mrf.mxu1 }
 0x17f   : > { %1872 = vst [vmem:[%s2788_s29 + $0x108] sm:$0xff] %v2191_v51  ;;  %1885 = vst [vmem:[%s2788_s29 + $0x158] sm:$0xf] %v2204_v52  ;;  %v2210_v57 = vpack.c.bf16 %v1507_v53, %v1507_v53  ;;  %v1482_v58 = vadd.f32 %v2781_v47, %v900_v54  ;;  %v1501_v59 = vadd.f32 %v2828_v42, %v1092_v55 }
 0x181   : > { %1891 = vst [vmem:[%s2788_s29 + $0x17c] sm:$0xf] %v2210_v57  ;;  %v2193_v60 = vpack.c.bf16 %v1482_v58, %v1481_v56  ;;  %v2206_v61 = vpack.c.bf16 %v1501_v59, %v1501_v59 }
 0x183   : > { %1874 = vst [vmem:[%s2788_s29 + $0x114] sm:$0xff] %v2193_v60  ;;  %1887 = vst [vmem:[%s2788_s29 + $0x164] sm:$0xf] %v2206_v61 }
 0x184   : > { %2496 = shalt.err (!%p2493_p5)
}
 0x185   : > { %s2497_s26 = scalar_lea.hbm %s2952_s6, 6144  ;;  %s2501_s20 = scalar_lea.hbm %s3008_s3, 12288 }
 0x186   : > { %p2498_p7 = scmp.ne.s32.totalorder %s2952_s6, %s2497_s26  ;;  %p2502_p9 = scmp.lt.s32.totalorder %s2952_s6, %s3008_s3 }
 0x187   : > { %p2503_p11 = scmp.lt.s32.totalorder %s2501_s20, %s2497_s26 }
 0x188   : > { %p2499_p6 = pnand %p2498_p7, %p2686_p13 }
 0x189   : > { %p2504_p12 = por %p2503_p11, %p2502_p9 }
 0x18a   : > { %p2500_p4 = pneg %p2499_p6 }
 0x18c   : > { %p2505_p1 = pnand %p2504_p12, %p2500_p4 }
 0x18e   : > { %2508 = shalt.err (!%p2505_p1)
}
 0x18f   : > { %s2577_s29 = smov 192   ;;  %s2578_s4 = smov 12  }
 0x190   : > { %2307 = dma.vmem_to_hbm [thread:$0]  (%p2686_p13), %s2954_s21, 6144, %s2952_s6, %s1893_s7, %s2577_s29, %s2577_s29, %s2578_s4  }
 0x191 PF: > { %s1924_s15 = sand.u32 1, %s2547_s12   ;;  %p3020_p8 = scmp.ne.s32.totalorder %s3013_s23, 0 }
 0x192   : > { %p3021_p10 = scmp.ge.s32.totalorder %s2567_s17, 2  ;;  %s1925_s5 = scalar_lea.sflag [#allocation5], %s1924_s15 }
 0x194   : > { %p2318_p0 = pnand %p3021_p10, %p3020_p8 }
 0x196   : > { %p2319_p2 = pneg %p2318_p0 }
 0x198   : > { %2542 = dma.done.wait (%p2319_p2), %s1925_s5, 6144  }
 0x199   : > { %2544 = vsyncadd (%p2319_p2), %s1925_s5, 4294961152  ;;  %s20_s17 = sadd.s32 1, %s2567_s17   ;;  %s3022_s12 = smov %s2551_s13 }
 0x19a   : > { %p17_p3 = scmp.ge.s32.totalorder %s20_s17, 4   ;;  %s3023_s13 = smov %s2555_s14 }
 0x19b   : > { %s3024_s14 = smov %s2695_s19  ;;  %s3025_s15 = smov %s2563_s16 }
 0x19c   : > { %s3026_s16 = smov %s3028_s28  ;;  %19 = sbr.rel (!%p17_p3) target bundleno = 7 (0x7), region = 93 }
 0x1a1   :  { %1930 = vsyncpa [#allocation4], 1 }
 0x1a2   :  { %1932 = vsyncpa [#allocation4 + $0x1], 1 }
 0x1a3   :  { %1933 = vsyncpa [#allocation7], 1 }
 0x1a4   :  { %1934 = vsyncpa [#allocation5], 1 }
 0x1a5   :  { %1936 = vsyncpa [#allocation5 + $0x1], 1 }

</bundles_post_ra>
